<compile_context>
chip_gen: v5e
topology: v5e:2x2
jax: 0.10.0
libtpu: 0.0.40
codegen_flags: <defaults>
</compile_context>

<pallas_src>
import functools

import jax
import jax.numpy as jnp
from jax import lax
from jax.experimental import pallas as pl
from jax.experimental.pallas import tpu as pltpu


# ----------------------------------------------------------------------------
# Fused kernel: one grid step = `batch_tile` documents.
# ----------------------------------------------------------------------------
def lsannc_kernel(x_ref, wxT_ref, bx_ref, wf_ref, b1_ref, k2T_ref, wp_ref, bp_ref,
                  out_ref, *, compute_dtype, t_valid):
    Bt, Tp, in_dim = x_ref.shape
    D = bx_ref.shape[-1]
    nd = D // 2
    H = b1_ref.shape[-1]
    L = k2T_ref.shape[-1]
    cdt = compute_dtype

    def mm(a, b):
        # compute_dtype MXU inputs, f32 accumulation.
        return jnp.dot(a, b, preferred_element_type=jnp.float32)

    # ---- token-wise layers on the flattened (Bt*Tp, .) axis: fills the MXU M dim ----
    xf = x_ref[...].reshape(Bt * Tp, in_dim)                 # free view (Tp % sublane == 0)
    xp = mm(xf, wxT_ref[...]) + bx_ref[...]                  # x_projection       (Bt*Tp, D) f32
    xp_c = xp.astype(cdt)                                    # cast once, reused by every matmul

    # One fused MXU push: [linear_first^T | blockdiag(nodes^T, nodes^T)]  -> (Bt*Tp, H + 2L)
    fused = mm(xp_c, wf_ref[...])
    sa = jnp.tanh(fused[:, :H] + b1_ref[...])                # linear_first + tanh (f32, EUP)
    logits = mm(sa.astype(cdt), k2T_ref[...])                # sa @ lin2(nodes)^T (Bt*Tp, L)
    s12 = fused[:, H:]                                       # [h1 @ nodes^T | h2 @ nodes^T]

    # ---- back to per-document layout (free views because Tp is a sublane multiple) ----
    logits = logits.reshape(Bt, Tp, L)
    s12 = s12.reshape(Bt, Tp, 2 * L)
    xp3 = xp_c.reshape(Bt, Tp, D)

    # lssa: softmax over the token axis (axis=1).  Denominator is tiny -> exact math.
    e = jnp.exp(logits - jnp.max(logits, axis=1, keepdims=True))
    if t_valid != Tp:  # static: mask code only emitted when tokens were padded
        tok = lax.broadcasted_iota(jnp.int32, (1, Tp, 1), 1) < t_valid
        e = jnp.where(tok, e, 0.0)
        s12 = jnp.where(tok, s12, 0.0)
    att = e * (1.0 / jnp.sum(e, axis=1, keepdims=True))      # (Bt, Tp, L), f32

    # ---- one batched contraction over tokens per document:
    #      [att | s1 | s2] (Bt,Tp,3L)  x  xp (Bt,Tp,D)  ->  (Bt, 3L, D)
    #      no explicit transpose materialized (contract axis 1 of both operands).
    lhs = jnp.concatenate([att, s12], axis=-1).astype(cdt)
    rep = lax.dot_general(lhs, xp3,
                          dimension_numbers=(((1,), (1,)), ((0,), (0,))),
                          preferred_element_type=jnp.float32)

    i_rep = rep[:, :L, :]                                    # att^T @ xp            (Bt, L, D)
    # l_rep: first half (cols :nd) from s1^T@xp rows, second half (cols nd:) from s2^T@xp rows.
    lane = lax.broadcasted_iota(jnp.int32, (1, 1, D), 2)
    l_rep = jnp.where(lane < nd, rep[:, L:2 * L, :], rep[:, 2 * L:, :])   # (Bt, L, D)

    # ---- DynamicWeightedFusion (eval): per-label scalar gates, softmax over the 2 inputs ----
    # Gates as VPU multiply + lane reduce (avoids 1-wide MXU dots).
    wp = wp_ref[...]                                         # (2, D) f32
    g_l = jnp.sum(l_rep * wp[0:1, :], axis=-1, keepdims=True) + bp_ref[0]
    g_i = jnp.sum(i_rep * wp[1:2, :], axis=-1, keepdims=True) + bp_ref[1]
    gm = jnp.maximum(g_l, g_i)
    e_l = jnp.exp(g_l - gm)
    e_i = jnp.exp(g_i - gm)
    w_l = e_l / (e_l + e_i)                                  # exact (2-wide denominator)
    out_ref[...] = (l_rep * w_l + i_rep * (1.0 - w_l)).astype(out_ref.dtype)


# ----------------------------------------------------------------------------
# Wrapper
# ----------------------------------------------------------------------------
@functools.partial(jax.jit,
                   static_argnames=("batch_tile", "compute_dtype", "vmem_limit_bytes"))
def lsannc_forward(x, nodes, params, batch_tile=None, compute_dtype=jnp.float32,
                   vmem_limit_bytes=None):
    """x: (B, T, in_dim); nodes: (L, node_dim) -> (B, L, 2*node_dim)."""
    B, T, in_dim = x.shape
    L, nd = nodes.shape
    D = 2 * nd
    H = params["w1"].shape[0]

    # bf16 MXU inputs only make sense (and are only supported) on a real TPU backend;
    # on CPU/interpret fall back to f32 (BF16xBF16->F32 dot is UNIMPLEMENTED there).
    cdt = compute_dtype if jax.default_backend() == "tpu" else jnp.float32

    # ---- tiny grid-invariant precompute + weight pre-transposition in plain XLA ----
    wxT = params["wx"].T.astype(cdt)                                           # (in_dim, D)
    bx = params["bx"].reshape(1, D).astype(jnp.float32)
    b1 = params["b1"].reshape(1, H).astype(jnp.float32)
    k2T = (nodes @ params["w2"].T + params["b2"].reshape(1, H)).T.astype(cdt)  # (H, L)
    # Fused RHS for one MXU push: [linear_first^T | blockdiag(nodes^T, nodes^T)] -> (D, H+2L)
    wf = jnp.zeros((D, H + 2 * L), jnp.float32)
    wf = wf.at[:, :H].set(params["w1"].T)
    wf = wf.at[:nd, H:H + L].set(nodes.T)
    wf = wf.at[nd:, H + L:].set(nodes.T)
    wf = wf.astype(cdt)
    wp = params["wp"].astype(jnp.float32)                                      # (2, D)
    bp = params["bp"].astype(jnp.float32)                                      # (2,)

    # ---- padding: tokens to a sublane multiple, batch to a multiple of batch_tile ----
    t_mult = 8 * (4 // jnp.dtype(cdt).itemsize)          # 8 for f32, 16 for bf16
    Tp = pl.cdiv(T, t_mult) * t_mult
    if batch_tile is None:
        # Target flattened MXU M-dim (batch_tile*Tp) ~>= 256 while keeping >= 2 grid steps
        # so dimension_semantics=("parallel",) can feed both v7x TensorCores.
        batch_tile = max(1, min(pl.cdiv(B, 2), pl.cdiv(256, Tp)))
    nb = pl.cdiv(B, batch_tile)
    B_pad = nb * batch_tile
    if (B_pad, Tp) != (B, T):
        x = jnp.pad(x, ((0, B_pad - B), (0, Tp - T), (0, 0)))
    x = x.astype(cdt)                                     # DMA x at compute precision

    kernel = functools.partial(lsannc_kernel, compute_dtype=cdt, t_valid=T)
    out = pl.pallas_call(
        kernel,
        out_shape=jax.ShapeDtypeStruct((B_pad, L, D), jnp.float32),
        grid=(nb,),
        in_specs=[
            pl.BlockSpec((batch_tile, Tp, in_dim), lambda b: (b, 0, 0)),   # x tile
            pl.BlockSpec((in_dim, D), lambda b: (0, 0)),                   # x_projection W^T
            pl.BlockSpec((1, D), lambda b: (0, 0)),                        # x_projection bias
            pl.BlockSpec((D, H + 2 * L), lambda b: (0, 0)),                # fused [w1^T | blkdiag(nodes^T)]
            pl.BlockSpec((1, H), lambda b: (0, 0)),                        # linear_first bias
            pl.BlockSpec((H, L), lambda b: (0, 0)),                        # linear_second(nodes)^T
            pl.BlockSpec((2, D), lambda b: (0, 0)),                        # DWF projection weights
            pl.BlockSpec(memory_space=pltpu.MemorySpace.SMEM),             # DWF projection biases (2,)
        ],
        out_specs=pl.BlockSpec((batch_tile, L, D), lambda b: (b, 0, 0)),
        compiler_params=pltpu.CompilerParams(
            dimension_semantics=("parallel",),
            vmem_limit_bytes=vmem_limit_bytes),
    )(x, wxT, bx, wf, b1, k2T, wp, bp)

    return out[:B]


# ----------------------------------------------------------------------------
# Pure-JAX reference (correctness check)
# ----------------------------------------------------------------------------
def lsannc_reference(x, nodes, params):
    nd = nodes.shape[-1]
    xp = x @ params["wx"].T + params["bx"]                               # (B, T, 2nd)
    # lssa
    sa = jnp.tanh(xp @ params["w1"].T + params["b1"])                    # (B, T, H)
    k = nodes @ params["w2"].T + params["b2"]                            # (L, H)
    att = jax.nn.softmax(sa @ k.T, axis=1)                               # softmax over tokens
    i = jnp.einsum("btl,btd->bld", att, xp)                              # (B, L, 2nd)
    # lsa (SplitWrapper over node_dim halves)
    h1, h2 = xp[..., :nd], xp[..., nd:]
    m1 = jnp.einsum("ln,btn->blt", nodes, h1)
    m2 = jnp.einsum("ln,btn->blt", nodes, h2)
    l = jnp.concatenate([jnp.einsum("blt,btn->bln", m1, h1),
                         jnp.einsum("blt,btn->bln", m2, h2)], axis=-1)   # (B, L, 2nd)
    # DWF (eval)
    g = jnp.stack([l @ params["wp"][0] + params["bp"][0],
                   i @ params["wp"][1] + params["bp"][1]], axis=-1)      # (B, L, 2)
    w = jax.nn.softmax(g, axis=-1)
    return l * w[..., 0:1] + i * w[..., 1:2]


if __name__ == "__main__":
    # Small shapes consistent with the module: batch=2, seq=8, in_dim=32, node_dim=16,
    # hidden_features=64, 16 labels.
    B, T = 2, 8
    in_dim, node_dim, H, L = 32, 16, 64, 16
    D = 2 * node_dim

    key = jax.random.PRNGKey(0)
    ks = jax.random.split(key, 12)
    x = jax.random.normal(ks[0], (B, T, in_dim), dtype=jnp.float32)
    nodes = jax.random.normal(ks[1], (L, node_dim), dtype=jnp.float32)

    def lin(k, o, i, s=0.1):
        return (s * jax.random.normal(k, (o, i))).astype(jnp.float32)

    def bias(k, n, s=0.1):
        return (s * jax.random.normal(k, (n,))).astype(jnp.float32)

    params = {
        "wx": lin(ks[2], D, in_dim), "bx": bias(ks[3], D),          # x_projection
        "w1": lin(ks[4], H, D),      "b1": bias(ks[5], H),          # lssa.linear_first
        "w2": lin(ks[6], H, node_dim), "b2": bias(ks[7], H),        # lssa.linear_second
        "wp": lin(ks[8], 2, D),      "bp": bias(ks[9], 2),          # DWF projections
    }

    ref = lsannc_reference(x, nodes, params)

    # f32 path, auto batch_tile (-> 2 grid steps: keeps both v7x TensorCores busy).
    out = jax.block_until_ready(lsannc_forward(x, nodes, params,
                                               compute_dtype=jnp.float32))
    assert out.shape == (B, L, D) and out.dtype == jnp.float32
    assert jnp.allclose(out, ref, atol=1e-2, rtol=1e-2), "f32 kernel mismatch vs reference"

    # Larger batch tile (exercises the batched dot_general with Bt > 1, single grid step).
    out2 = jax.block_until_ready(lsannc_forward(x, nodes, params, batch_tile=2,
                                                compute_dtype=jnp.float32))
    assert jnp.allclose(out2, ref, atol=1e-2, rtol=1e-2), "batch_tile=2 mismatch vs reference"

    # Ragged batch + token padding/masking path (T=6 -> padded to a sublane multiple).
    x3 = jax.random.normal(ks[10], (3, 6, in_dim), dtype=jnp.float32)
    ref3 = lsannc_reference(x3, nodes, params)
    out3 = jax.block_until_ready(lsannc_forward(x3, nodes, params,
                                                compute_dtype=jnp.float32))
    assert out3.shape == (3, L, D)
    assert jnp.allclose(out3, ref3, atol=1e-2, rtol=1e-2), "padded/masked path mismatch"

    # bf16 MXU inputs with f32 accumulation: only on a real TPU backend (CPU/interpret has no
    # BF16xBF16->F32 dot).  Recommended default on v6e/v7x.
    if jax.default_backend() == "tpu":
        out_bf16 = jax.block_until_ready(lsannc_forward(x, nodes, params,
                                                        compute_dtype=jnp.bfloat16))
        assert jnp.all(jnp.isfinite(out_bf16))
        assert jnp.max(jnp.abs(out_bf16 - ref)) < 0.1 * (1.0 + jnp.max(jnp.abs(ref)))

    print("KERNEL_OK")
</pallas_src>

<mosaic_0001>
module attributes {stable_mosaic.version = 11 : i64} {
  func.func @lsannc_kernel(%arg0: i32, %arg1: memref<1x8x32xf32, #tpu.memory_space<vmem>>, %arg2: memref<32x32xf32, #tpu.memory_space<vmem>>, %arg3: memref<1x32xf32, #tpu.memory_space<vmem>>, %arg4: memref<32x96xf32, #tpu.memory_space<vmem>>, %arg5: memref<1x64xf32, #tpu.memory_space<vmem>>, %arg6: memref<64x16xf32, #tpu.memory_space<vmem>>, %arg7: memref<2x32xf32, #tpu.memory_space<vmem>>, %arg8: memref<2xf32, #tpu.memory_space<smem>>, %arg9: memref<1x16x32xf32, #tpu.memory_space<vmem>>) attributes {dimension_semantics = [#tpu.dimension_semantics<parallel>], iteration_bounds = array<i64: 2>, scalar_prefetch = 0 : i64, scratch_operands = 0 : i64, tpu.core_type = #tpu.core_type<tc>, window_params = [{transform_indices = @transform_0, window_bounds = array<i64: 1, 8, 32>}, {pipeline_mode = #tpu.pipeline_mode<synchronous>, transform_indices = @transform_1, window_bounds = array<i64: 32, 32>}, {pipeline_mode = #tpu.pipeline_mode<synchronous>, transform_indices = @transform_2, window_bounds = array<i64: 1, 32>}, {pipeline_mode = #tpu.pipeline_mode<synchronous>, transform_indices = @transform_3, window_bounds = array<i64: 32, 96>}, {pipeline_mode = #tpu.pipeline_mode<synchronous>, transform_indices = @transform_4, window_bounds = array<i64: 1, 64>}, {pipeline_mode = #tpu.pipeline_mode<synchronous>, transform_indices = @transform_5, window_bounds = array<i64: 64, 16>}, {pipeline_mode = #tpu.pipeline_mode<synchronous>, transform_indices = @transform_6, window_bounds = array<i64: 2, 32>}, {transform_indices = @transform_7, window_bounds = array<i64: 2>}, {transform_indices = @transform_8, window_bounds = array<i64: 1, 16, 32>}]} {
    %c0 = arith.constant 0 : index
    %c0_0 = arith.constant 0 : index
    %c0_1 = arith.constant 0 : index
    %0 = vector.load %arg1[%c0, %c0_0, %c0_1] : memref<1x8x32xf32, #tpu.memory_space<vmem>>, vector<1x8x32xf32>
    %1 = vector.shape_cast %0 : vector<1x8x32xf32> to vector<8x32xf32>
    %c0_2 = arith.constant 0 : index
    %c0_3 = arith.constant 0 : index
    %2 = vector.load %arg2[%c0_2, %c0_3] : memref<32x32xf32, #tpu.memory_space<vmem>>, vector<32x32xf32>
    %cst = arith.constant dense<0.000000e+00> : vector<8x32xf32>
    %3 = tpu.matmul %1, %2, %cst {dimension_numbers = #tpu.dot_dimension_numbers<[1], [0], [0], [1], [0, 0, 1, 1], [], []>} : vector<8x32xf32>, vector<32x32xf32>, vector<8x32xf32> -> vector<8x32xf32>
    %c0_4 = arith.constant 0 : index
    %c0_5 = arith.constant 0 : index
    %4 = vector.load %arg3[%c0_4, %c0_5] : memref<1x32xf32, #tpu.memory_space<vmem>>, vector<1x32xf32>
    %5 = vector.broadcast %4 : vector<1x32xf32> to vector<8x32xf32>
    %6 = arith.addf %3, %5 : vector<8x32xf32>
    %c0_6 = arith.constant 0 : index
    %c0_7 = arith.constant 0 : index
    %7 = vector.load %arg4[%c0_6, %c0_7] : memref<32x96xf32, #tpu.memory_space<vmem>>, vector<32x96xf32>
    %cst_8 = arith.constant dense<0.000000e+00> : vector<8x96xf32>
    %8 = tpu.matmul %6, %7, %cst_8 {dimension_numbers = #tpu.dot_dimension_numbers<[1], [0], [0], [1], [0, 0, 1, 1], [], []>} : vector<8x32xf32>, vector<32x96xf32>, vector<8x96xf32> -> vector<8x96xf32>
    %9 = vector.extract_strided_slice %8 {offsets = [0, 0], sizes = [8, 64], strides = [1, 1]} : vector<8x96xf32> to vector<8x64xf32>
    %c0_9 = arith.constant 0 : index
    %c0_10 = arith.constant 0 : index
    %10 = vector.load %arg5[%c0_9, %c0_10] : memref<1x64xf32, #tpu.memory_space<vmem>>, vector<1x64xf32>
    %11 = vector.broadcast %10 : vector<1x64xf32> to vector<8x64xf32>
    %12 = arith.addf %9, %11 : vector<8x64xf32>
    %13 = math.tanh %12 : vector<8x64xf32>
    %c0_11 = arith.constant 0 : index
    %c0_12 = arith.constant 0 : index
    %14 = vector.load %arg6[%c0_11, %c0_12] : memref<64x16xf32, #tpu.memory_space<vmem>>, vector<64x16xf32>
    %cst_13 = arith.constant dense<0.000000e+00> : vector<8x16xf32>
    %15 = tpu.matmul %13, %14, %cst_13 {dimension_numbers = #tpu.dot_dimension_numbers<[1], [0], [0], [1], [0, 0, 1, 1], [], []>} : vector<8x64xf32>, vector<64x16xf32>, vector<8x16xf32> -> vector<8x16xf32>
    %16 = vector.extract_strided_slice %8 {offsets = [0, 64], sizes = [8, 32], strides = [1, 1]} : vector<8x96xf32> to vector<8x32xf32>
    %17 = vector.shape_cast %15 : vector<8x16xf32> to vector<1x8x16xf32>
    %18 = vector.shape_cast %16 : vector<8x32xf32> to vector<1x8x32xf32>
    %19 = vector.shape_cast %6 : vector<8x32xf32> to vector<1x8x32xf32>
    %cst_14 = arith.constant dense<0xFF800000> : vector<1x16xf32>
    %20 = vector.multi_reduction <maximumf>, %17, %cst_14 [1] : vector<1x8x16xf32> to vector<1x16xf32>
    %21 = vector.shape_cast %20 : vector<1x16xf32> to vector<1x1x16xf32>
    %22 = vector.broadcast %21 : vector<1x1x16xf32> to vector<1x8x16xf32>
    %23 = arith.subf %17, %22 : vector<1x8x16xf32>
    %24 = math.exp %23 : vector<1x8x16xf32>
    %cst_15 = arith.constant dense<0.000000e+00> : vector<1x16xf32>
    %25 = vector.multi_reduction <add>, %24, %cst_15 [1] : vector<1x8x16xf32> to vector<1x16xf32>
    %26 = vector.shape_cast %25 : vector<1x16xf32> to vector<1x1x16xf32>
    %cst_16 = arith.constant 1.000000e+00 : f32
    %27 = vector.broadcast %cst_16 : f32 to vector<1x1x16xf32>
    %28 = arith.divf %27, %26 : vector<1x1x16xf32>
    %29 = vector.broadcast %28 : vector<1x1x16xf32> to vector<1x8x16xf32>
    %30 = arith.mulf %24, %29 : vector<1x8x16xf32>
    %31 = tpu.concatenate %30, %18 in 2 : vector<1x8x16xf32>, vector<1x8x32xf32> -> vector<1x8x48xf32>
    %cst_17 = arith.constant dense<0.000000e+00> : vector<1x48x32xf32>
    %32 = tpu.matmul %31, %19, %cst_17 {dimension_numbers = #tpu.dot_dimension_numbers<[1], [1], [2], [2], [0, 0, 0, 2, 1, 2], [0], [0]>} : vector<1x8x48xf32>, vector<1x8x32xf32>, vector<1x48x32xf32> -> vector<1x48x32xf32>
    %33 = vector.extract_strided_slice %32 {offsets = [0, 0, 0], sizes = [1, 16, 32], strides = [1, 1, 1]} : vector<1x48x32xf32> to vector<1x16x32xf32>
    %34 = tpu.iota {dimensions = array<i32: 2>} : vector<1x1x32xi32>
    %c16_i32 = arith.constant 16 : i32
    %35 = vector.broadcast %c16_i32 : i32 to vector<1x1x32xi32>
    %36 = arith.cmpi slt, %34, %35 : vector<1x1x32xi32>
    %37 = vector.extract_strided_slice %32 {offsets = [0, 16, 0], sizes = [1, 16, 32], strides = [1, 1, 1]} : vector<1x48x32xf32> to vector<1x16x32xf32>
    %38 = vector.extract_strided_slice %32 {offsets = [0, 32, 0], sizes = [1, 16, 32], strides = [1, 1, 1]} : vector<1x48x32xf32> to vector<1x16x32xf32>
    %39 = vector.shape_cast %36 : vector<1x1x32xi1> to vector<1x1x32xi1>
    %40 = vector.broadcast %39 : vector<1x1x32xi1> to vector<1x16x32xi1>
    %41 = arith.select %40, %37, %38 : vector<1x16x32xi1>, vector<1x16x32xf32>
    %c0_18 = arith.constant 0 : index
    %c0_19 = arith.constant 0 : index
    %42 = vector.load %arg7[%c0_18, %c0_19] : memref<2x32xf32, #tpu.memory_space<vmem>>, vector<2x32xf32>
    %43 = vector.extract_strided_slice %42 {offsets = [0, 0], sizes = [1, 32], strides = [1, 1]} : vector<2x32xf32> to vector<1x32xf32>
    %44 = vector.shape_cast %43 : vector<1x32xf32> to vector<1x1x32xf32>
    %45 = vector.broadcast %44 : vector<1x1x32xf32> to vector<1x16x32xf32>
    %46 = arith.mulf %41, %45 : vector<1x16x32xf32>
    %cst_20 = arith.constant dense<0.000000e+00> : vector<1x16xf32>
    %47 = vector.multi_reduction <add>, %46, %cst_20 [2] : vector<1x16x32xf32> to vector<1x16xf32>
    %48 = vector.shape_cast %47 : vector<1x16xf32> to vector<1x16x1xf32>
    %c0_21 = arith.constant 0 : index
    %49 = memref.load %arg8[%c0_21] : memref<2xf32, #tpu.memory_space<smem>>
    %50 = vector.broadcast %49 : f32 to vector<1x16x1xf32>
    %51 = arith.addf %48, %50 : vector<1x16x1xf32>
    %52 = vector.extract_strided_slice %42 {offsets = [1, 0], sizes = [1, 32], strides = [1, 1]} : vector<2x32xf32> to vector<1x32xf32>
    %53 = vector.shape_cast %52 : vector<1x32xf32> to vector<1x1x32xf32>
    %54 = vector.broadcast %53 : vector<1x1x32xf32> to vector<1x16x32xf32>
    %55 = arith.mulf %33, %54 : vector<1x16x32xf32>
    %cst_22 = arith.constant dense<0.000000e+00> : vector<1x16xf32>
    %56 = vector.multi_reduction <add>, %55, %cst_22 [2] : vector<1x16x32xf32> to vector<1x16xf32>
    %57 = vector.shape_cast %56 : vector<1x16xf32> to vector<1x16x1xf32>
    %c1 = arith.constant 1 : index
    %58 = memref.load %arg8[%c1] : memref<2xf32, #tpu.memory_space<smem>>
    %59 = vector.broadcast %58 : f32 to vector<1x16x1xf32>
    %60 = arith.addf %57, %59 : vector<1x16x1xf32>
    %61 = arith.maximumf %51, %60 : vector<1x16x1xf32>
    %62 = arith.subf %51, %61 : vector<1x16x1xf32>
    %63 = math.exp %62 : vector<1x16x1xf32>
    %64 = arith.subf %60, %61 : vector<1x16x1xf32>
    %65 = math.exp %64 : vector<1x16x1xf32>
    %66 = arith.addf %63, %65 : vector<1x16x1xf32>
    %67 = arith.divf %63, %66 : vector<1x16x1xf32>
    %68 = vector.broadcast %67 : vector<1x16x1xf32> to vector<1x16x32xf32>
    %69 = arith.mulf %41, %68 : vector<1x16x32xf32>
    %cst_23 = arith.constant 1.000000e+00 : f32
    %70 = vector.broadcast %cst_23 : f32 to vector<1x16x1xf32>
    %71 = arith.subf %70, %67 : vector<1x16x1xf32>
    %72 = vector.broadcast %71 : vector<1x16x1xf32> to vector<1x16x32xf32>
    %73 = arith.mulf %33, %72 : vector<1x16x32xf32>
    %74 = arith.addf %69, %73 : vector<1x16x32xf32>
    %c0_24 = arith.constant 0 : index
    %c0_25 = arith.constant 0 : index
    %c0_26 = arith.constant 0 : index
    %75 = vector.load %arg9[%c0_24, %c0_25, %c0_26] : memref<1x16x32xf32, #tpu.memory_space<vmem>>, vector<1x16x32xf32>
    tpu.vector_store %arg9[%c0_24, %c0_25, %c0_26], %74 {strides = array<i32>} : memref<1x16x32xf32, #tpu.memory_space<vmem>>, vector<1x16x32xf32>,
    return
  }
  func.func @transform_0(%arg0: i32) -> (i32, i32, i32) {
    %c0_i32 = arith.constant 0 : i32
    %c0_i32_0 = arith.constant 0 : i32
    %c0_i32_1 = arith.constant 0 : i32
    return %arg0, %c0_i32, %c0_i32_0 : i32, i32, i32
  }
  func.func @transform_1(%arg0: i32) -> (i32, i32) {
    %c0_i32 = arith.constant 0 : i32
    %c0_i32_0 = arith.constant 0 : i32
    %c0_i32_1 = arith.constant 0 : i32
    return %c0_i32, %c0_i32_0 : i32, i32
  }
  func.func @transform_2(%arg0: i32) -> (i32, i32) {
    %c0_i32 = arith.constant 0 : i32
    %c0_i32_0 = arith.constant 0 : i32
    %c0_i32_1 = arith.constant 0 : i32
    return %c0_i32, %c0_i32_0 : i32, i32
  }
  func.func @transform_3(%arg0: i32) -> (i32, i32) {
    %c0_i32 = arith.constant 0 : i32
    %c0_i32_0 = arith.constant 0 : i32
    %c0_i32_1 = arith.constant 0 : i32
    return %c0_i32, %c0_i32_0 : i32, i32
  }
  func.func @transform_4(%arg0: i32) -> (i32, i32) {
    %c0_i32 = arith.constant 0 : i32
    %c0_i32_0 = arith.constant 0 : i32
    %c0_i32_1 = arith.constant 0 : i32
    return %c0_i32, %c0_i32_0 : i32, i32
  }
  func.func @transform_5(%arg0: i32) -> (i32, i32) {
    %c0_i32 = arith.constant 0 : i32
    %c0_i32_0 = arith.constant 0 : i32
    %c0_i32_1 = arith.constant 0 : i32
    return %c0_i32, %c0_i32_0 : i32, i32
  }
  func.func @transform_6(%arg0: i32) -> (i32, i32) {
    %c0_i32 = arith.constant 0 : i32
    %c0_i32_0 = arith.constant 0 : i32
    %c0_i32_1 = arith.constant 0 : i32
    return %c0_i32, %c0_i32_0 : i32, i32
  }
  func.func @transform_7(%arg0: i32) -> i32 {
    %c0_i32 = arith.constant 0 : i32
    %c0_i32_0 = arith.constant 0 : i32
    return %c0_i32 : i32
  }
  func.func @transform_8(%arg0: i32) -> (i32, i32, i32) {
    %c0_i32 = arith.constant 0 : i32
    %c0_i32_0 = arith.constant 0 : i32
    %c0_i32_1 = arith.constant 0 : i32
    return %arg0, %c0_i32, %c0_i32_0 : i32, i32, i32
  }
}

</mosaic_0001>

<bundles_post_ra>
// kernel: lsannc_forward.1
= control target key start
LH: loop header
LB: loop body
LE: loop exit
PB: predicated region body
PF: predicated region fallthrough
CT: control target
= control target key end

     0   :  { %13 = vsyncpa [#allocation4], 0  ;;  %s1126_s0 = inlined_call_operand.vmem [shape: f32[2,8,32], index: 0, kind: input, shape index: {}]   ;;  %s1127_s1 = inlined_call_operand.vmem [shape: f32[32,32], index: 1, kind: input, shape index: {}]   ;;  %s1128_s2 = inlined_call_operand.vmem [shape: f32[1,32], index: 2, kind: input, shape index: {}]   ;;  %s1129_s3 = inlined_call_operand.vmem [shape: f32[32,96], index: 3, kind: input, shape index: {}]   ;;  %s1130_s4 = inlined_call_operand.vmem [shape: f32[1,64], index: 4, kind: input, shape index: {}]   ;;  %s1131_s5 = inlined_call_operand.vmem [shape: f32[64,16], index: 5, kind: input, shape index: {}]   ;;  %s1132_s6 = inlined_call_operand.vmem [shape: f32[2,32], index: 6, kind: input, shape index: {}]   ;;  %s1133_s7 = inlined_call_operand.vmem [shape: f32[2], index: 7, kind: input, shape index: {}]   ;;  %s1134_s8 = inlined_call_operand.hbm [shape: f32[2,16,32], index: 8, kind: output, shape index: {}]  }
   0x1   :  { %14 = vsyncpa [#allocation3], 0 }
   0x2   :  { %16 = vsyncpa [#allocation3 + $0x1], 0  ;;  %s949_s27 = smov 0   ;;  %s951_s28 = smov 0  }
   0x3   :  { %s953_s29 = smov 0   ;;  %s955_s30 = smov 0  }
   0x4 LB: > { %s970_s9 = sadd.s32 4294967295, %s898_s30   ;;  %s718_s10 = sadd.s32 4294967294, %s898_s30   ;;  %s898_s30 = sphi %s955_s30, %s1140_s30   ;;  %s894_s29 = sphi %s953_s29, %s1139_s29   ;;  %s890_s28 = sphi %s951_s28, %s1138_s28   ;;  %s886_s27 = sphi %s949_s27, %s1137_s27  }
   0x5   : > { %s974_s11 = sadd.s32 1, %s898_s30   ;;  %s202_s12 = sadd.s32 1, %s894_s29 }
   0x6   : > { %s199_s13 = ssub.s32 %s898_s30, %s974_s11  ;;  %p212_p0 = scmp.ne.s32.totalorder %s894_s29, %s890_s28 }
   0x7   : > { %p200_p1 = scmp.eq.s32.totalorder %s199_s13, 0  ;;  %p213_p2 = scmp.eq.s32.totalorder %s970_s9, 1 }
   0x8   : > { %p218_p3 = scmp.ne.s32.totalorder %s890_s28, %s886_s27  ;;  %p219_p4 = scmp.eq.s32.totalorder %s718_s10, 1 }
   0x9   : > { %s985_s14 = scalar_select %p200_p1, %s894_s29, %s202_s12  }
   0xa   : > { %p987_p5 = por %p213_p2, %p212_p0  ;;  %p991_p6 = por %p219_p4, %p218_p3 }
   0xb   : > { %p719_p7 = scmp.ge.s32.totalorder %s898_s30, 1  ;;  %p226_p8 = scmp.lt.s32.totalorder %s898_s30, 3 }
   0xc   : > { %p757_p9 = scmp.eq.s32.totalorder %s970_s9, 0  ;;  %s256_s19 = sshll.u32 %s1133_s7, 4  ;;  %s257_s19 = int_to_ptr.vmem [resolvable:$true] %s256_s19 }
   0xd   : > { %p227_p10 = pnand %p719_p7, %p226_p8  ;;  %s900_s20 = smov [#allocation2]  }
   0xf   : > { %p749_p11 = pneg %p227_p10  ;;  %276 = sbr.rel (%p227_p10) target bundleno = 987 (0x3db), region = 52 }
  0x11   : > { %p750_p12 = pnand %p757_p9, %p749_p11 }
  0x13   : > { %752 = dma.vmem_to_smem (!%p750_p12), %s257_s19, 16, %s900_s20, [#allocation4]  }
  0x14   : > { %877 = dma.done.wait (%p757_p9), [#allocation4], 16  }
  0x15   : > { %879 = vsyncadd (%p757_p9), [#allocation4], 4294967280 }
  0x16   : > { %283 = sfence }
  0x17   : > { %v319_v0 = vld [vmem:[%s1127_s1 + $0x18] sm:$0xff]  ;;  %v318_v1 = vld [vmem:[%s1127_s1 + $0x10] sm:$0xff]  ;;  %p311_p13 = scmp.lt.s32.totalorder %s970_s9, 1  ;;  %v317_v2 = vld [vmem:[%s1127_s1 + $0x8] sm:$0xff]  ;;  %vm324_vm0 = vcmask 261120   ;;  %s901_s23 = smov 80  }
  0x18   : > { %340 = vmatpush.msra.mxu1 %v319_v0  ;;  %v316_v3 = vld [vmem:[%s1127_s1] sm:$0xff]  ;;  %v351_v5 = vld [vmem:[%s1129_s3 + $0x18] sm:$0xff]  ;;  %v350_v6 = vld [vmem:[%s1129_s3 + $0x10] sm:$0xff]  ;;  %vm389_vm1 = vcmask 523264   ;;  %vm413_vm2 = vcmask 130048   ;;  %vm484_vm7 = vcmask 64512  }
  0x19   : > { %s312_s10 = scalar_select %p311_p13, %s970_s9, 1  ;;  %v349_v7 = vld [vmem:[%s1129_s3 + $0x8] sm:$0xff]  ;;  %v348_v8 = vld [vmem:[%s1129_s3] sm:$0xff]  ;;  %v388_v9 = vld [vmem:[%s1131_s5 + $0x38] sm:$0xff] }
  0x1a   : > { %341 = vmatpush.msra.mxu1 %v318_v1  ;;  %v387_v10 = vld [vmem:[%s1131_s5 + $0x30] sm:$0xff]  ;;  %401 = vmatpush.msra.mxu2 %v388_v9  ;;  %v386_v11 = vld [vmem:[%s1131_s5 + $0x28] sm:$0xff]  ;;  %v797_v12 = vld [vmem:[%s1128_s2] ss:$0 sm:$0xff]  ;;  %s735_s26 = sld [smem:[#allocation2 + $0x1]]  ;;  %s308_s12 = sand.u32 1, %s890_s28  }
  0x1b   : > { %s725_s17 = sshll.u32 %s312_s10, 3  ;;  %v385_v15 = vld [vmem:[%s1131_s5 + $0x20] sm:$0xff]  ;;  %v384_v16 = vld [vmem:[%s1131_s5 + $0x18] sm:$0xff]  ;;  %v383_v17 = vld [vmem:[%s1131_s5 + $0x10] sm:$0xff]  ;;  %s555_s10 = sld [smem:[#allocation2]] }
  0x1c   : > { %342 = vmatpush.msra.mxu1 %v317_v2  ;;  %s314_s20 = scalar_lea.vmem %s1126_s0, %s725_s17  ;;  %402 = vmatpush.msra.mxu2 %v387_v10  ;;  %v382_v18 = vld [vmem:[%s1131_s5 + $0x8] sm:$0xff]  ;;  %v381_v19 = vld [vmem:[%s1131_s5] sm:$0xff]  ;;  %s724_s13 = sshll.u32 %s308_s12, 4 }
  0x1d   : > { %v315_v4 = vld [vmem:[%s314_s20] sm:$0xff]  ;;  %s741_s17 = sshll.u32 %s970_s9, 4  ;;  %s310_s21 = scalar_lea.vmem [#allocation5], %s724_s13 }
  0x1e   : > { %343 = vmatpush.msra.mxu1 %v316_v3  ;;  %403 = vmatpush.msra.mxu2 %v386_v11  ;;  %v798_v20 = vld [vmem:[%s1130_s4] ss:$0 sm:$0xff]  ;;  %s640_s20 = scalar_lea.hbm %s1134_s8, %s741_s17  ;;  %s641_s22 = sshll.u32 %s310_s21, 4  ;;  %s642_s22 = int_to_ptr.vmem [resolvable:$true] %s641_s22 }
  0x1f   : > { %726 = vmatmul.msk.f32.vlgmr.msra.gmra.mxu1 %vm324_vm0, %v315_v4  ;;  %v545_v61 = vld [vmem:[%s1132_s6] sm:$0x3]  ;;  %s629_s9 = scalar_lea.sflag [#allocation3], %s308_s12  ;;  %s852_s13 = scalar_lea.hbm %s1134_s8, 32 }
  0x20   : > { %367 = vmatpush.msrb.mxu1 %v351_v5  ;;  %404 = vmatpush.msra.mxu2 %v385_v15  ;;  %v559_v62 = vperm.slane %v545_v61, 1  ;;  %v538_v5 = vlaneseq }
  0x22   : > { %368 = vmatpush.msrb.mxu1 %v350_v6  ;;  %405 = vmatpush.msra.mxu2 %v384_v16 }
  0x24   : > { %369 = vmatpush.msrb.mxu1 %v349_v7  ;;  %406 = vmatpush.msra.mxu2 %v383_v17  ;;  %v539_v7 = vand.u32 127, %v538_v5 }
  0x26   : > { %370 = vmatpush.msrb.mxu1 %v348_v8  ;;  %407 = vmatpush.msra.mxu2 %v382_v18  ;;  %vm540_vm8 = vcmp.lt.s32.totalorder %v539_v7, 16  ;;  %v546_v8 = vperm.slane %v545_v61, 0 }
  0x28   : > { %408 = vmatpush.msra.mxu2 %v381_v19  ;;  %v569_v19 = vstv %s735_s26 }
  0x9c   : > { %v345_v13 = vpop.f32.mrf.mxu1 }
  0x9d   : > { %v346_v14 = vadd.f32 %v797_v12, %v345_v13 }
  0x9f   : > { %727 = vmatmul.msk.f32.vlgmr.msrb.gmra.mxu1 %vm324_vm0, %v346_v14  ;;  %518 = vmatpush.msra.mxu0 %v346_v14 }
  0xa0   : > { %742 = vmatpush.msra.mxu3 %v346_v14 }
 0x11c   : > { %v372_v21 = vpop.f32.mrf.mxu1 }
 0x11d   : > { %v379_v22 = vadd.f32 %v798_v20, %v372_v21  ;;  %448 = vrot.lane.b32.xlu0 %v372_v21, %s901_s23  ;;  %v556_v20 = vstv %s555_s10  ;;  %s643_s23 = sshll.u32 %s640_s20, 4  ;;  %s644_s23 = int_to_ptr.hbm [resolvable:$true] %s643_s23 }
 0x11e   : > { %s846_s24 = sshra.s32 %s644_s23, 4  ;;  %s847_s24 = int_to_ptr.hbm [resolvable:$true] %s846_s24 }
 0x11f   : > { %799 = vtanh.f32 %v379_v22  ;;  %s848_s25 = scalar_lea.hbm %s847_s24, 16  ;;  %p853_p3 = scmp.lt.s32.totalorder %s847_s24, %s1134_s8 }
 0x120   : > { %p849_p0 = scmp.ne.s32.totalorder %s847_s24, %s848_s25  ;;  %p854_p4 = scmp.lt.s32.totalorder %s852_s13, %s848_s25 }
 0x122   : > { %p850_p1 = pnand %p849_p0, %p987_p5  ;;  %p855_p7 = por %p854_p4, %p853_p3 }
 0x124   : > { %p851_p2 = pneg %p850_p1 }
 0x125   : > { %v800_v23 = vpop.eup %799 }
 0x126   : > { %728 = vmatmul.msk.f32.vlgmr.msra.gmra.mxu2 %vm389_vm1, %v800_v23  ;;  %p856_p8 = pnand %p855_p7, %p851_p2 }
 0x18f   : > { %v449_v53 = vpop.permute.xlu0 %448 }
 0x1a9   : > { %v410_v24 = vpop.f32.mrf.mxu2 }
 0x1aa   : > { %v414_v25 = vsel %vm413_vm2, %v410_v24, -inf }
 0x1ab   : > { %v415_v26 = vrot.slane %v414_v25, 4 }
 0x1ad   : > { %v416_v27 = vmax.f32 %v414_v25, %v415_v26 }
 0x1af   : > { %v417_v28 = vrot.slane %v416_v27, 2 }
 0x1b1   : > { %v418_v29 = vmax.f32 %v416_v27, %v417_v28 }
 0x1b3   : > { %v419_v30 = vrot.slane %v418_v29, 1 }
 0x1b5   : > { %v420_v31 = vmax.f32 %v418_v29, %v419_v30 }
 0x1b7   : > { %v421_v32 = vsub.f32 %v410_v24, %v420_v31 }
 0x1b9   : > { %v422_v33 = vmul.f32 1.442695, %v421_v32 }
 0x1bb   : > { %801 = vpow2.f32 %v422_v33 }
 0x1c1   : > { %v802_v34 = vpop.eup %801 }
 0x1c2   : > { %v424_v35 = vsel %vm413_vm2, %v802_v34, 0.0 }
 0x1c3   : > { %v425_v36 = vrot.slane %v424_v35, 4 }
 0x1c5   : > { %v426_v37 = vadd.f32 %v425_v36, %v424_v35 }
 0x1c7   : > { %v427_v38 = vrot.slane %v426_v37, 2 }
 0x1c9   : > { %v428_v39 = vadd.f32 %v427_v38, %v426_v37 }
 0x1cb   : > { %v429_v40 = vrot.slane %v428_v39, 1 }
 0x1cd   : > { %v430_v41 = vadd.f32 %v429_v40, %v428_v39 }
 0x1cf   : > { %803 = vrcp.f32 %v430_v41  ;;  %v442_v45 = vand.u32 2147483648, %v430_v41  ;;  %v440_v47 = vand.u32 2147483647, %v430_v41  ;;  %vm436_vm4 = vweird.f32 %v430_v41 }
 0x1d1   : > { %v443_v49 = vor.u32 1.1754944e-38, %v442_v45  ;;  %vm441_vm6 = vcmp.eq.f32.partialorder %v440_v47, 8.507059e+37 }
 0x1d5   : > { %v804_v42 = vpop.eup %803 }
 0x1d6   : > { %v432_v43 = vmul.f32 %v804_v42, %v430_v41  ;;  %vm437_vm3 = vweird.f32 %v804_v42 }
 0x1d7   : > { %vm438_vm5 = vmor %vm436_vm4, %vm437_vm3 }
 0x1d8   : > { %v433_v44 = vsub.f32 1.0, %v432_v43 }
 0x1da   : > { %v434_v46 = vmul.f32 %v804_v42, %v433_v44 }
 0x1dc   : > { %v435_v48 = vadd.f32 %v804_v42, %v434_v46 }
 0x1de   : > { %v439_v50 = vsel %vm438_vm5, %v804_v42, %v435_v48 }
 0x1df   : > { %v444_v51 = vsel %vm441_vm6, %v443_v49, %v439_v50 }
 0x1e0   : > { %v446_v52 = vmul.f32 %v802_v34, %v444_v51 }
 0x1e2   : > { %v451_v54 = vsel %vm413_vm2, %v446_v52, %v449_v53 }
 0x1e3   : > { %452 = vxpose.xlu0.b32.start.end [1/1] (short) (narrow) %v451_v54, 48 }
 0x287   : > { %v468_v55 = vpop.trf.xlu0 }
 0x288   : > { %729 = vmatmul.msk.f32.vlgmr.msra.gmra.mxu0 %vm484_vm7, %v468_v55 }
 0x28f   : > { %v469_v56 = vpop.trf.xlu0 }
 0x290   : > { %730 = vmatmul.msk.f32.gmra.mxu0 %vm484_vm7, %v469_v56 }
 0x297   : > { %v470_v57 = vpop.trf.xlu0 }
 0x298   : > { %731 = vmatmul.msk.f32.gmra.mxu0 %vm484_vm7, %v470_v57 }
 0x29f   : > { %v471_v58 = vpop.trf.xlu0 }
 0x2a0   : > { %732 = vmatmul.msk.f32.vlgmr.msra.gmra.mxu3 %vm484_vm7, %v471_v58 }
 0x2a7   : > { %v472_v59 = vpop.trf.xlu0 }
 0x2a8   : > { %733 = vmatmul.msk.f32.gmra.mxu3 %vm484_vm7, %v472_v59 }
 0x2af   : > { %v473_v60 = vpop.trf.xlu0 }
 0x2b0   : > { %734 = vmatmul.msk.f32.gmra.mxu3 %vm484_vm7, %v473_v60 }
 0x305   : > { %v1068_v63 = vpop.f32.mrf.mxu0 }
 0x306   : > { %v560_v0 = vmul.f32 %v559_v62, %v1068_v63 }
 0x308   : > { %v562_v1 = vsel %vm324_vm0, %v560_v0, 0.0 }
 0x309   : > { %563 = vadd.xlane.f32.xlu2 %v562_v1 }
 0x30d   : > { %v1072_v2 = vpop.f32.mrf.mxu0 }
 0x30e   : > { %v561_v3 = vmul.f32 %v559_v62, %v1072_v2 }
 0x310   : > { %v565_v4 = vsel %vm324_vm0, %v561_v3, 0.0 }
 0x311   : > { %566 = vadd.xlane.f32.xlu2 %v565_v4 }
 0x315   : > { %v526_v9 = vpop.f32.mrf.mxu0 }
 0x323   : > { %v529_v6 = vpop.f32.mrf.mxu3 }
 0x32b   : > { %v532_v10 = vpop.f32.mrf.mxu3 }
 0x32c   : > { %v1076_v11 = vsel %vm540_vm8, %v526_v9, %v532_v10 }
 0x32d   : > { %v547_v12 = vmul.f32 %v546_v8, %v1076_v11 }
 0x32f   : > { %v549_v13 = vsel %vm324_vm0, %v547_v12, 0.0 }
 0x330   : > { %550 = vadd.xlane.f32.xlu1 %v549_v13 }
 0x333   : > { %v535_v14 = vpop.f32.mrf.mxu3 }
 0x334   : > { %v1080_v15 = vsel %vm540_vm8, %v529_v6, %v535_v14 }
 0x335   : > { %v548_v16 = vmul.f32 %v546_v8, %v1080_v15 }
 0x337   : > { %v552_v17 = vsel %vm324_vm0, %v548_v16, 0.0 }
 0x338   : > { %553 = vadd.xlane.f32.xlu1 %v552_v17 }
 0x37c   : > { %v564_v18 = vpop.xlane.xlu2 %563 }
 0x37d   : > { %v570_v22 = vadd.f32 %v569_v19, %v564_v18 }
 0x384   : > { %v567_v27 = vpop.xlane.xlu2 %566 }
 0x385   : > { %v571_v31 = vadd.f32 %v569_v19, %v567_v27 }
 0x3a3   : > { %v551_v21 = vpop.xlane.xlu1 %550 }
 0x3a4   : > { %v557_v23 = vadd.f32 %v556_v20, %v551_v21 }
 0x3a6   : > { %v572_v24 = vmax.f32 %v557_v23, %v570_v22 }
 0x3a8   : > { %v574_v25 = vsub.f32 %v557_v23, %v572_v24  ;;  %v580_v26 = vsub.f32 %v570_v22, %v572_v24 }
 0x3aa   : > { %v576_v28 = vmul.f32 1.442695, %v574_v25  ;;  %v582_v29 = vmul.f32 1.442695, %v580_v26 }
 0x3ab   : > { %v554_v30 = vpop.xlane.xlu1 %553 }
 0x3ac   : > { %805 = vpow2.f32 %v576_v28  ;;  %v558_v32 = vadd.f32 %v556_v20, %v554_v30 }
 0x3ad   : > { %807 = vpow2.f32 %v582_v29 }
 0x3ae   : > { %v573_v33 = vmax.f32 %v558_v32, %v571_v31 }
 0x3b0   : > { %v575_v34 = vsub.f32 %v558_v32, %v573_v33  ;;  %v581_v35 = vsub.f32 %v571_v31, %v573_v33 }
 0x3b2   : > { %v806_v36 = vpop.eup %805  ;;  %v578_v37 = vmul.f32 1.442695, %v575_v34  ;;  %v584_v38 = vmul.f32 1.442695, %v581_v35 }
 0x3b3   : > { %v808_v39 = vpop.eup %807 }
 0x3b4   : > { %v586_v40 = vadd.f32 %v808_v39, %v806_v36  ;;  %809 = vpow2.f32 %v578_v37 }
 0x3b5   : > { %811 = vpow2.f32 %v584_v38 }
 0x3b6   : > { %813 = vrcp.f32 %v586_v40  ;;  %v599_v47 = vand.u32 2147483648, %v586_v40  ;;  %v597_v49 = vand.u32 2147483647, %v586_v40  ;;  %vm593_vm10 = vweird.f32 %v586_v40 }
 0x3b8   : > { %v600_v52 = vor.u32 1.1754944e-38, %v599_v47  ;;  %vm598_vm12 = vcmp.eq.f32.partialorder %v597_v49, 8.507059e+37 }
 0x3ba   : > { %v810_v41 = vpop.eup %809 }
 0x3bb   : > { %v812_v42 = vpop.eup %811 }
 0x3bc   : > { %v814_v43 = vpop.eup %813  ;;  %v587_v44 = vadd.f32 %v812_v42, %v810_v41 }
 0x3bd   : > { %v589_v45 = vmul.f32 %v814_v43, %v586_v40  ;;  %vm594_vm9 = vweird.f32 %v814_v43 }
 0x3be   : > { %815 = vrcp.f32 %v587_v44  ;;  %vm595_vm11 = vmor %vm593_vm10, %vm594_vm9  ;;  %v614_v58 = vand.u32 2147483648, %v587_v44  ;;  %v612_v61 = vand.u32 2147483647, %v587_v44  ;;  %vm608_vm14 = vweird.f32 %v587_v44 }
 0x3bf   : > { %v590_v46 = vsub.f32 1.0, %v589_v45 }
 0x3c0   : > { %v615_v3 = vor.u32 1.1754944e-38, %v614_v58  ;;  %vm613_vm1 = vcmp.eq.f32.partialorder %v612_v61, 8.507059e+37 }
 0x3c1   : > { %v591_v48 = vmul.f32 %v814_v43, %v590_v46 }
 0x3c3   : > { %v592_v50 = vadd.f32 %v814_v43, %v591_v48 }
 0x3c4   : > { %v816_v51 = vpop.eup %815 }
 0x3c5   : > { %v596_v53 = vsel %vm595_vm11, %v814_v43, %v592_v50  ;;  %v604_v54 = vmul.f32 %v816_v51, %v587_v44  ;;  %vm609_vm13 = vweird.f32 %v816_v51 }
 0x3c6   : > { %v601_v55 = vsel %vm598_vm12, %v600_v52, %v596_v53  ;;  %vm610_vm15 = vmor %vm608_vm14, %vm609_vm13 }
 0x3c7   : > { %v602_v56 = vmul.f32 %v806_v36, %v601_v55  ;;  %v605_v57 = vsub.f32 1.0, %v604_v54 }
 0x3c9   : > { %v620_v59 = vsub.f32 1.0, %v602_v56  ;;  %v606_v60 = vmul.f32 %v816_v51, %v605_v57  ;;  %v618_v62 = vmul.f32 %v602_v56, %v1076_v11 }
 0x3cb   : > { %v622_v0 = vmul.f32 %v620_v59, %v1068_v63  ;;  %v607_v1 = vadd.f32 %v816_v51, %v606_v60 }
 0x3cd   : > { %v624_v4 = vadd.f32 %v622_v0, %v618_v62  ;;  %v611_v5 = vsel %vm610_vm15, %v816_v51, %v607_v1 }
 0x3ce   : > { %v616_v6 = vsel %vm613_vm1, %v615_v3, %v611_v5 }
 0x3cf   : > { %v617_v7 = vmul.f32 %v810_v41, %v616_v6  ;;  %626 = vst.msk [vmem:[%s310_s21] sm:$0xff] %vm324_vm0, %v624_v4 }
 0x3d1   : > { %v621_v63 = vsub.f32 1.0, %v617_v7  ;;  %v619_v8 = vmul.f32 %v617_v7, %v1080_v15 }
 0x3d3   : > { %v623_v9 = vmul.f32 %v621_v63, %v1072_v2 }
 0x3d5   : > { %v625_v10 = vadd.f32 %v623_v9, %v619_v8 }
 0x3d7   : > { %627 = vst.msk [vmem:[%s310_s21 + $0x8] sm:$0xff] %vm324_vm0, %v625_v10 }
 0x3d8   : > { %859 = shalt.err (!%p856_p8)
}
 0x3d9   : > { %s902_s12 = smov 128   ;;  %s903_s19 = smov 8  }
 0x3da   : > { %747 = dma.vmem_to_hbm [thread:$0]  (%p987_p5), %s642_s22, 256, %s644_s23, %s629_s9, %s902_s12, %s902_s12, %s903_s19  }
 0x3db PF: > { %p759_p9 = scmp.ge.s32.totalorder %s898_s30, 2  ;;  %s658_s20 = sand.u32 1, %s886_s27  }
 0x3dc   : > { %s659_s21 = scalar_lea.sflag [#allocation3], %s658_s20 }
 0x3dd   : > { %p754_p10 = pnand %p759_p9, %p991_p6 }
 0x3df   : > { %p755_p11 = pneg %p754_p10 }
 0x3e1   : > { %881 = dma.done.wait (%p755_p11), %s659_s21, 256  }
 0x3e2   : > { %883 = vsyncadd (%p755_p11), %s659_s21, 4294967040  ;;  %p19_p12 = scmp.ge.s32.totalorder %s974_s11, 4   ;;  %s1137_s27 = smov %s890_s28 }
 0x3e3   : > { %s1138_s28 = smov %s894_s29  ;;  %s1139_s29 = smov %s985_s14 }
 0x3e4   : > { %s1140_s30 = smov %s974_s11  ;;  %21 = sbr.rel (!%p19_p12) target bundleno = 4 (0x4), region = 92 }
 0x3e9   :  { %665 = vsyncpa [#allocation3], 1 }
 0x3ea   :  { %667 = vsyncpa [#allocation3 + $0x1], 1 }
 0x3eb   :  { %668 = vsyncpa [#allocation4], 1 }
 0x3ec   :  { %670 = vsyncpa [#allocation4 + $0x1], 1 }

</bundles_post_ra>
